<compile_context>
chip_gen: v6e
topology: v6e:2x2x1
jax: 0.10.0
libtpu: 0.0.40
codegen_flags: <defaults>
</compile_context>

<pallas_src>
import functools
import math

import jax
import jax.numpy as jnp
from jax.experimental import pallas as pl
from jax.experimental.pallas import tpu as pltpu


def _voxel_count_loss_kernel(pred_ref, inp_ref, out_ref, acc_ref, *,
                             target_ratio, rows_total, tile_rows, sub_rows,
                             unroll, mask_from, use_masked, tiny):
    c = pl.program_id(0)                 # reduction-split slot (v7x megacore)
    k = pl.program_id(2)                 # local row-block index in this slot
    n_k_local = pl.num_programs(2)
    k_global = c * n_k_local + k         # global row-block index

    @pl.when(k == 0)
    def _():
        acc_ref[...] = jnp.zeros_like(acc_ref)

    if tiny:
        # Fewer than 8 total (128-lane) rows: single partial vreg, no loop.
        p = pred_ref[0].astype(jnp.float32)
        v = inp_ref[0].astype(jnp.float32)
        acc_ref[0:1, :] += jnp.sum(p - target_ratio * v, axis=0, keepdims=True)
    else:
        n_sub = tile_rows // sub_rows

        def slab_sum(rows_valid):
            # Sum (pred - ratio*vox) over this (tile_rows, 128) block into a
            # register-resident (8, 128) partial.  Sub-slab loop bounds live
            # f32 temporaries so multi-MiB blocks stay VMEM-cheap.
            def body(i, carry):
                base = pl.multiple_of(i * sub_rows, sub_rows)
                p = pred_ref[0, pl.ds(base, sub_rows), :].astype(jnp.float32)
                v = inp_ref[0, pl.ds(base, sub_rows), :].astype(jnp.float32)
                d = p - target_ratio * v
                if rows_valid is not None:
                    # Zero rows past the end of the (partial / duplicated)
                    # edge block; Pallas does not zero edge-block padding.
                    rid = jax.lax.broadcasted_iota(
                        jnp.int32, (sub_rows, 128), 0)
                    d = jnp.where(rid < (rows_valid - base), d, 0.0)
                return carry + jnp.sum(d.reshape(sub_rows // 8, 8, 128),
                                       axis=0)

            init = jnp.zeros((8, 128), jnp.float32)
            return jax.lax.fori_loop(0, n_sub, body, init, unroll=unroll)

        if use_masked:
            # Only the final (possibly ragged or duplicated) global row block
            # pays the mask; every other block is a plain VPU accumulate.
            @pl.when(k_global < mask_from)
            def _():
                acc_ref[...] += slab_sum(None)

            @pl.when(k_global >= mask_from)
            def _():
                rows_valid = rows_total - k_global * tile_rows
                acc_ref[...] += slab_sum(rows_valid)
        else:
            acc_ref[...] += slab_sum(None)

    @pl.when(k == n_k_local - 1)
    def _():
        # Per-(slot, batch) partial signed sum; abs / grid_size / mean happen
        # in the (tiny) wrapper epilogue so reduction splitting stays linear.
        out_ref[0, 0] = acc_ref[...]


def voxel_count_loss(pred, input_voxels, target_ratio=2.0,
                     block_bytes=8 * 1024 * 1024):
    """pred, input_voxels: (B, C, D, H, W). Returns a scalar float32 loss."""
    assert pred.shape == input_voxels.shape
    B = pred.shape[0]
    grid_size = math.prod(pred.shape[1:])

    # Free, contiguous row-major reshapes -- no pad, no dtype copy in HBM.
    x = pred.reshape(B, grid_size)
    y = input_voxels.reshape(B, grid_size)

    if grid_size % 128 != 0:
        # TODO(synk): rare ragged-lane case (C*D*H*W not a multiple of 128);
        # the zero-pad copies both tensors in HBM -- fold into an in-kernel
        # lane mask if this path ever becomes hot.
        pad = (-grid_size) % 128
        x = jnp.pad(x, ((0, 0), (0, pad)))
        y = jnp.pad(y, ((0, 0), (0, pad)))

    R = x.shape[1] // 128
    x = x.reshape(B, R, 128)
    y = y.reshape(B, R, 128)

    itemsize = max(jnp.dtype(pred.dtype).itemsize,
                   jnp.dtype(input_voxels.dtype).itemsize)

    # Row-block size: ~block_bytes of native-dtype data per input per step
    # (amortizes per-step overhead), rows a multiple of 8 (full f32 vregs).
    target_rows = max(512, (block_bytes // (128 * itemsize)) // 512 * 512)
    tiny = R < 8
    if R >= target_rows:
        tile_rows = target_rows
    elif R >= 512:
        tile_rows = (R // 512) * 512
    elif not tiny:
        tile_rows = (R // 8) * 8
    else:
        tile_rows = R                      # tiny input: single full block
    n_k_total = pl.cdiv(R, tile_rows)
    ragged = (R % tile_rows) != 0

    # Sub-slab rows for the in-kernel reduction loop (bounds f32 temps).
    if tiny:
        sub_rows = tile_rows
    else:
        sub_rows = 8
        for s in (256, 128, 64, 32, 16):
            if tile_rows % s == 0:
                sub_rows = s
                break
    unroll = max(1, min(4, tile_rows // max(sub_rows, 1)))

    # v7x megacore: when the batch axis alone cannot keep both TensorCores
    # busy (odd B, incl. B == 1), add a leading size-2 "parallel" axis that
    # halves the row reduction; partials are combined in the wrapper.
    # Harmless on single-core v5e/v6e.
    nc = 2 if (B % 2 == 1 and n_k_total >= 2) else 1
    n_k_per_core = pl.cdiv(n_k_total, nc)

    # Blocks past n_k_total-1 exist only when the split is uneven; their DMA
    # index is clamped in the index_map and their rows are fully masked.
    use_masked = ragged or (nc * n_k_per_core > n_k_total)
    mask_from = (n_k_total - 1) if ragged else n_k_total

    if nc == 1:
        in_idx = lambda c, b, k: (b, k, 0)
    else:
        in_idx = lambda c, b, k: (
            b, jnp.minimum(c * n_k_per_core + k, n_k_total - 1), 0)

    kernel = functools.partial(
        _voxel_count_loss_kernel,
        target_ratio=float(target_ratio),
        rows_total=R,
        tile_rows=tile_rows,
        sub_rows=sub_rows,
        unroll=unroll,
        mask_from=mask_from,
        use_masked=use_masked,
        tiny=tiny,
    )

    # VMEM budget from the actual working set (not a fixed constant).
    block_in_bytes = tile_rows * 128 * itemsize
    f32_temp_bytes = 2 * unroll * sub_rows * 128 * 4
    vmem_limit = int(2 * 2 * block_in_bytes        # 2 inputs x double buffer
                     + 2 * (8 * 128 * 4)           # double-buffered out block
                     + (8 * 128 * 4)               # accumulator scratch
                     + 2 * f32_temp_bytes          # in-kernel f32 temps
                     + 4 * 1024 * 1024)            # Mosaic internal margin
    vmem_limit = max(vmem_limit, 16 * 1024 * 1024)

    # NOTE: for very small R with very large B one could fold several batch
    # elements per block to amortize per-step overhead further; not needed
    # for typical voxel-grid sizes.
    out = pl.pallas_call(
        kernel,
        out_shape=jax.ShapeDtypeStruct((nc, B, 8, 128), jnp.float32),
        grid_spec=pltpu.PrefetchScalarGridSpec(
            num_scalar_prefetch=0,
            grid=(nc, B, n_k_per_core),
            in_specs=[
                pl.BlockSpec((1, tile_rows, 128), in_idx),
                pl.BlockSpec((1, tile_rows, 128), in_idx),
            ],
            out_specs=pl.BlockSpec((1, 1, 8, 128),
                                   lambda c, b, k: (c, b, 0, 0)),
            scratch_shapes=[
                pltpu.VMEM((8, 128), jnp.float32),   # fused partial-sum acc
            ],
        ),
        compiler_params=pltpu.CompilerParams(
            # (reduction-split, batch) are independent -> "parallel";
            # the row axis is the reduction -> "arbitrary", kept last.
            dimension_semantics=("parallel", "parallel", "arbitrary"),
            vmem_limit_bytes=vmem_limit,
        ),
    )(x, y)

    # Tiny epilogue: per-batch signed sum -> |.| / grid_size -> batch mean.
    signed = jnp.sum(out, axis=(0, 2, 3))            # (B,)
    return jnp.mean(jnp.abs(signed) / grid_size)


def voxel_count_loss_ref(pred, input_voxels, target_ratio=2.0):
    pred_count = jnp.sum(pred, axis=(1, 2, 3, 4))
    input_count = jnp.sum(input_voxels, axis=(1, 2, 3, 4))
    target_count = target_ratio * input_count
    grid_size = pred[0].size
    count_penalty = jnp.abs(pred_count - target_count) / grid_size
    return jnp.mean(count_penalty)


if __name__ == "__main__":
    key = jax.random.PRNGKey(0)

    def make_case(case_key, shape):
        k1, k2 = jax.random.split(case_key)
        p = jax.nn.sigmoid(jax.random.normal(k1, shape, dtype=jnp.float32))
        v = (jax.random.uniform(k2, shape) > 0.5).astype(jnp.float32)
        return p, v

    cases = [
        (2, 4, 8, 8, 8),    # R=16: single full row block, plain path
        (3, 4, 4, 10, 8),   # R=10: ragged last block + odd-batch 2-slot split
        (2, 3, 5, 8, 8),    # grid_size=960 (not /128): lane-pad fallback
    ]
    keys = jax.random.split(key, len(cases))
    for ck, shape in zip(keys, cases):
        pred, vox = make_case(ck, shape)
        loss = jax.block_until_ready(
            voxel_count_loss(pred, vox, target_ratio=2.0))
        ref = voxel_count_loss_ref(pred, vox, target_ratio=2.0)
        assert jnp.allclose(loss, ref, rtol=1e-5, atol=1e-6), (shape, loss, ref)

    print("KERNEL_OK")
</pallas_src>

<mosaic_0001>
module attributes {stable_mosaic.version = 11 : i64} {
  func.func @_voxel_count_loss_kernel(%arg0: i32, %arg1: i32, %arg2: i32, %arg3: memref<1x16x128xf32, #tpu.memory_space<vmem>>, %arg4: memref<1x16x128xf32, #tpu.memory_space<vmem>>, %arg5: memref<1x1x8x128xf32, #tpu.memory_space<vmem>>, %arg6: memref<8x128xf32, #tpu.memory_space<vmem>>) attributes {dimension_semantics = [#tpu.dimension_semantics<parallel>, #tpu.dimension_semantics<parallel>, #tpu.dimension_semantics<arbitrary>], iteration_bounds = array<i64: 1, 2, 1>, scalar_prefetch = 0 : i64, scratch_operands = 1 : i64, tpu.core_type = #tpu.core_type<tc>, window_params = [{transform_indices = @transform_0, window_bounds = array<i64: 1, 16, 128>}, {transform_indices = @transform_1, window_bounds = array<i64: 1, 16, 128>}, {transform_indices = @transform_2, window_bounds = array<i64: 1, 1, 8, 128>}]} {
    %c0_i32 = arith.constant 0 : i32
    %0 = arith.cmpi eq, %arg2, %c0_i32 : i32
    %1 = arith.extui %0 : i1 to i32
    %c0_i32_0 = arith.constant 0 : i32
    %2 = arith.cmpi ne, %1, %c0_i32_0 : i32
    scf.if %2 {
      %cst_13 = arith.constant 0.000000e+00 : f32
      %24 = vector.broadcast %cst_13 : f32 to vector<8x128xf32>
      %c0_14 = arith.constant 0 : index
      %c0_15 = arith.constant 0 : index
      %25 = vector.load %arg6[%c0_14, %c0_15] : memref<8x128xf32, #tpu.memory_space<vmem>>, vector<8x128xf32>
      tpu.vector_store %arg6[%c0_14, %c0_15], %24 {strides = array<i32>} : memref<8x128xf32, #tpu.memory_space<vmem>>, vector<8x128xf32>,
    } else {
    }
    %c0 = arith.constant 0 : index
    %c0_1 = arith.constant 0 : index
    %3 = vector.load %arg6[%c0, %c0_1] : memref<8x128xf32, #tpu.memory_space<vmem>>, vector<8x128xf32>
    %cst = arith.constant 0.000000e+00 : f32
    %4 = vector.broadcast %cst : f32 to vector<8x128xf32>
    %c0_i32_2 = arith.constant 0 : i32
    %c16_i32 = arith.constant 16 : i32
    %5 = arith.muli %c0_i32_2, %c16_i32 : i32
    %6 = tpu.assume_multiple %5, 16 : i32
    %c0_3 = arith.constant 0 : index
    %7 = arith.index_cast %6 : i32 to index
    %c0_4 = arith.constant 0 : index
    %8 = vector.load %arg3[%c0_3, %7, %c0_4] : memref<1x16x128xf32, #tpu.memory_space<vmem>>, vector<1x16x128xf32>
    %9 = vector.shape_cast %8 : vector<1x16x128xf32> to vector<16x128xf32>
    %c0_5 = arith.constant 0 : index
    %10 = arith.index_cast %6 : i32 to index
    %c0_6 = arith.constant 0 : index
    %11 = vector.load %arg4[%c0_5, %10, %c0_6] : memref<1x16x128xf32, #tpu.memory_space<vmem>>, vector<1x16x128xf32>
    %12 = vector.shape_cast %11 : vector<1x16x128xf32> to vector<16x128xf32>
    %cst_7 = arith.constant 2.000000e+00 : f32
    %13 = vector.broadcast %cst_7 : f32 to vector<16x128xf32>
    %14 = arith.mulf %13, %12 : vector<16x128xf32>
    %15 = arith.subf %9, %14 : vector<16x128xf32>
    %16 = vector.shape_cast %15 : vector<16x128xf32> to vector<2x8x128xf32>
    %cst_8 = arith.constant dense<0.000000e+00> : vector<8x128xf32>
    %17 = vector.multi_reduction <add>, %16, %cst_8 [0] : vector<2x8x128xf32> to vector<8x128xf32>
    %18 = arith.addf %4, %17 : vector<8x128xf32>
    %c1_i32 = arith.constant 1 : i32
    %19 = arith.addf %3, %18 : vector<8x128xf32>
    %c0_9 = arith.constant 0 : index
    %c0_10 = arith.constant 0 : index
    %20 = vector.load %arg6[%c0_9, %c0_10] : memref<8x128xf32, #tpu.memory_space<vmem>>, vector<8x128xf32>
    tpu.vector_store %arg6[%c0_9, %c0_10], %19 {strides = array<i32>} : memref<8x128xf32, #tpu.memory_space<vmem>>, vector<8x128xf32>,
    %c0_i32_11 = arith.constant 0 : i32
    %21 = arith.cmpi eq, %arg2, %c0_i32_11 : i32
    %22 = arith.extui %21 : i1 to i32
    %c0_i32_12 = arith.constant 0 : i32
    %23 = arith.cmpi ne, %22, %c0_i32_12 : i32
    scf.if %23 {
      %c0_13 = arith.constant 0 : index
      %c0_14 = arith.constant 0 : index
      %24 = vector.load %arg6[%c0_13, %c0_14] : memref<8x128xf32, #tpu.memory_space<vmem>>, vector<8x128xf32>
      %c0_15 = arith.constant 0 : index
      %c0_16 = arith.constant 0 : index
      %c0_17 = arith.constant 0 : index
      %c0_18 = arith.constant 0 : index
      %25 = vector.load %arg5[%c0_15, %c0_16, %c0_17, %c0_18] : memref<1x1x8x128xf32, #tpu.memory_space<vmem>>, vector<1x1x8x128xf32>
      %26 = vector.shape_cast %25 : vector<1x1x8x128xf32> to vector<8x128xf32>
      %27 = vector.shape_cast %24 : vector<8x128xf32> to vector<1x1x8x128xf32>
      tpu.vector_store %arg5[%c0_15, %c0_16, %c0_17, %c0_18], %27 {strides = array<i32>} : memref<1x1x8x128xf32, #tpu.memory_space<vmem>>, vector<1x1x8x128xf32>,
    } else {
    }
    return
  }
  func.func @transform_0(%arg0: i32, %arg1: i32, %arg2: i32) -> (i32, i32, i32) {
    %c0_i32 = arith.constant 0 : i32
    %c0_i32_0 = arith.constant 0 : i32
    return %arg1, %arg2, %c0_i32 : i32, i32, i32
  }
  func.func @transform_1(%arg0: i32, %arg1: i32, %arg2: i32) -> (i32, i32, i32) {
    %c0_i32 = arith.constant 0 : i32
    %c0_i32_0 = arith.constant 0 : i32
    return %arg1, %arg2, %c0_i32 : i32, i32, i32
  }
  func.func @transform_2(%arg0: i32, %arg1: i32, %arg2: i32) -> (i32, i32, i32, i32) {
    %c0_i32 = arith.constant 0 : i32
    %c0_i32_0 = arith.constant 0 : i32
    %c0_i32_1 = arith.constant 0 : i32
    return %arg0, %arg1, %c0_i32, %c0_i32_0 : i32, i32, i32, i32
  }
}

</mosaic_0001>

<bundles_post_ra>
// kernel: tpu_custom_call.1
= control target key start
LH: loop header
LB: loop body
LE: loop exit
PB: predicated region body
PF: predicated region fallthrough
CT: control target
= control target key end

     0   :  { %7 = vsyncpa [#allocation4], 0  ;;  %s803_s0 = inlined_call_operand.hbm [shape: f32[2,16,128], index: 0, kind: input, shape index: {}]   ;;  %s804_s1 = inlined_call_operand.hbm [shape: f32[2,16,128], index: 1, kind: input, shape index: {}]   ;;  %s805_s2 = inlined_call_operand.hbm [shape: f32[1,2,8,128], index: 2, kind: output, shape index: {}]  }
   0x1   :  { %9 = vsyncpa [#allocation4 + $0x1], 0 }
   0x2   :  { %10 = vsyncpa [#allocation7], 0 }
   0x3   :  { %12 = vsyncpa [#allocation7 + $0x1], 0 }
   0x4   :  { %13 = vsyncpa [#allocation5], 0 }
   0x5   :  { %15 = vsyncpa [#allocation5 + $0x1], 0  ;;  %s635_s9 = smov 0   ;;  %s637_s10 = smov 0  }
   0x6   :  { %s639_s11 = smov 0   ;;  %s641_s12 = smov 0  }
   0x7   :  { %s643_s13 = smov 0   ;;  %s645_s14 = smov 0  }
   0x8 LB: > { %s384_s15 = sadd.s32 4294967295, %s613_s14   ;;  %s385_s16 = sadd.s32 4294967294, %s613_s14   ;;  %s613_s14 = sphi %s645_s14, %s21_s14   ;;  %s609_s13 = sphi %s643_s13, %s817_s13   ;;  %s605_s12 = sphi %s641_s12, %s816_s12   ;;  %s601_s11 = sphi %s639_s11, %s815_s11   ;;  %s597_s10 = sphi %s637_s10, %s814_s10   ;;  %s593_s9 = sphi %s635_s9, %s813_s9  }
   0x9   : > { %s36_s17 = sadd.s32 1, %s609_s13  ;;  %s49_s18 = sadd.s32 1, %s601_s11 }
   0xa   : > { %p38_p0 = scmp.ge.s32.totalorder %s36_s17, 2  ;;  %p56_p1 = scmp.ne.s32.totalorder %s601_s11, %s597_s10 }
   0xb   : > { %p57_p2 = scmp.eq.s32.totalorder %s613_s14, 0  ;;  %p62_p3 = scmp.ne.s32.totalorder %s597_s10, %s593_s9 }
   0xc   : > { %s819_s17 = smov (%p38_p0, %s36_s17), 0  ;;  %p63_p5 = scmp.eq.s32.totalorder %s384_s15, 0 }
   0xd   : > { %p676_p4 = por %p57_p2, %p56_p1  ;;  %s44_s20 = ssub.s32 %s609_s13, %s819_s17 }
   0xe   : > { %p116_p6 = scmp.eq.s32.totalorder %s384_s15, 1  ;;  %p47_p7 = scmp.eq.s32.totalorder %s44_s20, 0 }
   0xf   : > { %p682_p8 = por %p63_p5, %p62_p3  ;;  %p122_p10 = scmp.eq.s32.totalorder %s385_s16, 1 }
  0x10   : > { %p686_p9 = por %p116_p6, %p56_p1  ;;  %p421_p13 = scmp.lt.s32.totalorder %s613_s14, 2 }
  0x11   : > { %s691_s23 = scalar_select %p47_p7, %s601_s11, %s49_s18  }
  0x12   : > { %p693_p11 = por %p122_p10, %p62_p3  ;;  %s700_s25 = sand.u32 1, %s601_s11  }
  0x13   : > { %s388_s26 = sshll.u32 %s700_s25, 4  ;;  %s402_s27 = sshll.u32 %s609_s13, 8 }
  0x14   : > { %s154_s30 = scalar_lea.hbm %s803_s0, %s402_s27  ;;  %s146_s3 = scalar_lea.vmem [#allocation3], %s388_s26 }
  0x15   : > { %s155_s4 = sshll.u32 %s146_s3, 4  ;;  %p713_p0 = pnand %p421_p13, %p676_p4  ;;  %s156_s4 = int_to_ptr.vmem [resolvable:$true] %s155_s4 }
  0x16   : > { %p394_p1 = scmp.ge.s32.totalorder %s613_s14, 1  ;;  %s143_s6 = scalar_lea.sflag [#allocation4], %s700_s25 }
  0x17   : > { %p475_p2 = pneg %p713_p0  ;;  %s486_s7 = scalar_lea.vmem %s156_s4, 256 }
  0x18   : > { %p487_p3 = scmp.ne.s32.totalorder %s156_s4, %s486_s7  ;;  %s615_s8 = smov [#allocation3]  }
  0x19   : > { %s491_s15 = sshll.u32 %s615_s8, 4  ;;  %s492_s15 = int_to_ptr.vmem [resolvable:$false] %s491_s15 }
  0x1a   : > { %p489_p5 = pnand %p487_p3, %p475_p2  ;;  %s493_s16 = scalar_lea.vmem %s492_s15, 512 }
  0x1b   : > { %p494_p4 = scmp.lt.s32.totalorder %s156_s4, %s492_s15  ;;  %p495_p7 = scmp.lt.s32.totalorder %s493_s16, %s486_s7 }
  0x1c   : > { %p490_p6 = pneg %p489_p5 }
  0x1d   : > { %p496_p10 = por %p495_p7, %p494_p4 }
  0x1f   : > { %p497_p13 = pnand %p496_p10, %p490_p6 }
  0x21   : > { %500 = shalt.err (!%p497_p13)
}
  0x22   : > { %s616_s18 = smov 128   ;;  %s617_s19 = smov 8  }
  0x23   : > { %413 = dma.hbm_to_vmem [thread:$0]  (!%p713_p0), %s154_s30, 256, %s156_s4, %s143_s6, %s616_s18, %s616_s18, %s617_s19  }
  0x24   : > { %p186_p3 = scmp.lt.s32.totalorder %s613_s14, 3  ;;  %s177_s29 = scalar_lea.hbm %s804_s1, %s402_s27 }
  0x25   : > { %s169_s7 = scalar_lea.vmem [#allocation6], %s388_s26  ;;  %s166_s15 = scalar_lea.sflag [#allocation7], %s700_s25 }
  0x26   : > { %p734_p5 = pnand %p394_p1, %p186_p3  ;;  %s178_s8 = sshll.u32 %s169_s7, 4  ;;  %s179_s8 = int_to_ptr.vmem [resolvable:$true] %s178_s8 }
  0x27   : > { %s514_s16 = scalar_lea.vmem %s179_s8, 256  ;;  %s618_s30 = smov [#allocation6]  }
  0x28   : > { %p515_p6 = scmp.ne.s32.totalorder %s179_s8, %s514_s16  ;;  %s519_s4 = sshll.u32 %s618_s30, 4  ;;  %s520_s4 = int_to_ptr.vmem [resolvable:$false] %s519_s4 }
  0x29   : > { %s521_s27 = scalar_lea.vmem %s520_s4, 512  ;;  %p522_p10 = scmp.lt.s32.totalorder %s179_s8, %s520_s4 }
  0x2a   : > { %p517_p4 = pnand %p515_p6, %p475_p2  ;;  %p523_p1 = scmp.lt.s32.totalorder %s521_s27, %s514_s16 }
  0x2c   : > { %p518_p7 = pneg %p517_p4  ;;  %p524_p13 = por %p523_p1, %p522_p10 }
  0x2e   : > { %p525_p3 = pnand %p524_p13, %p518_p7 }
  0x30   : > { %528 = shalt.err (!%p525_p3)
}
  0x31   : > { %416 = dma.hbm_to_vmem [thread:$0]  (!%p713_p0), %s177_s29, 256, %s179_s8, %s166_s15, %s616_s18, %s616_s18, %s617_s19  }
  0x32   : > { %190 = sbr.rel (%p734_p5) target bundleno = 82 (0x52), region = 28  ;;  %s749_s25 = sand.u32 (!%p734_p5), 1, %s597_s10  }
  0x33   : > { %s395_s26 = sshll.u32 (!%p734_p5), %s749_s25, 4  ;;  %s193_s6 = scalar_lea.sflag (!%p734_p5), [#allocation4], %s749_s25 }
  0x34   : > { %s196_s20 = scalar_lea.vmem (!%p734_p5), [#allocation3], %s395_s26 }
  0x37   : > { %580 = dma.done.wait (%p682_p8), %s193_s6, 256  }
  0x38   : > { %582 = vsyncadd (%p682_p8), %s193_s6, 4294967040  ;;  %s202_s5 = scalar_lea.sflag [#allocation7], %s749_s25  ;;  %s205_s18 = scalar_lea.vmem [#allocation6], %s395_s26 }
  0x39   : > { %584 = dma.done.wait (%p682_p8), %s202_s5, 256  }
  0x3a   : > { %586 = vsyncadd (%p682_p8), %s202_s5, 4294967040  ;;  %s397_s19 = sshll.u32 %s749_s25, 3  ;;  %v239_v0 = vld [vmem:[%s196_s20] sm:$0xff]  ;;  %v240_v2 = vld [vmem:[%s196_s20 + $0x8] sm:$0xff]  ;;  %s399_s3 = sshll.u32 %s605_s12, 7 }
  0x3b   : > { %v241_v1 = vld [vmem:[%s205_s18] sm:$0xff]  ;;  %v242_v3 = vld [vmem:[%s205_s18 + $0x8] sm:$0xff]  ;;  %s230_s28 = scalar_lea.vmem [#allocation8], %s397_s19  ;;  %s270_s8 = scalar_lea.hbm %s805_s2, %s399_s3 }
  0x3c   : > { %v243_v4 = vmul.f32 2.0, %v241_v1  ;;  %v244_v5 = vmul.f32 2.0, %v242_v3  ;;  %s272_s29 = sshll.u32 %s230_s28, 4  ;;  %s257_s15 = scalar_lea.sflag [#allocation5], %s749_s25  ;;  %s273_s29 = int_to_ptr.vmem [resolvable:$true] %s272_s29 }
  0x3d   : > { %s529_s16 = scalar_lea.vmem %s273_s29, 128  ;;  %s619_s30 = smov [#allocation8]  }
  0x3e   : > { %v245_v6 = vsub.f32 %v239_v0, %v243_v4  ;;  %v246_v7 = vsub.f32 %v240_v2, %v244_v5  ;;  %p530_p8 = scmp.ne.s32.totalorder %s273_s29, %s529_s16  ;;  %s533_s4 = sshll.u32 %s619_s30, 4  ;;  %s534_s4 = int_to_ptr.vmem [resolvable:$false] %s533_s4 }
  0x3f   : > { %s535_s27 = scalar_lea.vmem %s534_s4, 256  ;;  %p536_p5 = scmp.lt.s32.totalorder %s273_s29, %s534_s4 }
  0x40   : > { %v247_v8 = vadd.f32 %v246_v7, %v245_v6  ;;  %p531_p0 = pnand %p530_p8, %p686_p9  ;;  %p537_p6 = scmp.lt.s32.totalorder %s535_s27, %s529_s16 }
  0x42   : > { %255 = vst [vmem:[%s230_s28] sm:$0xff] %v247_v8  ;;  %p532_p2 = pneg %p531_p0  ;;  %p538_p4 = por %p537_p6, %p536_p5 }
  0x44   : > { %p539_p7 = pnand %p538_p4, %p532_p2 }
  0x46   : > { %542 = shalt.err (!%p539_p7)
}
  0x47   : > { %s543_s12 = scalar_lea.hbm %s270_s8, 128  ;;  %s547_s6 = scalar_lea.hbm %s805_s2, 256 }
  0x48   : > { %p544_p10 = scmp.ne.s32.totalorder %s270_s8, %s543_s12  ;;  %p548_p3 = scmp.lt.s32.totalorder %s270_s8, %s805_s2 }
  0x49   : > { %p549_p8 = scmp.lt.s32.totalorder %s547_s6, %s543_s12 }
  0x4a   : > { %p545_p1 = pnand %p544_p10, %p686_p9 }
  0x4b   : > { %p550_p0 = por %p549_p8, %p548_p3 }
  0x4c   : > { %p546_p13 = pneg %p545_p1 }
  0x4e   : > { %p551_p12 = pnand %p550_p0, %p546_p13 }
  0x50   : > { %554 = shalt.err (!%p551_p12)
}
  0x51   : > { %408 = dma.vmem_to_hbm [thread:$0]  (%p686_p9), %s273_s29, 128, %s270_s8, %s257_s15  }
  0x52 PF: > { %s284_s18 = sand.u32 1, %s593_s9   ;;  %p812_p2 = scmp.ge.s32.totalorder %s613_s14, 2 }
  0x53   : > { %s285_s19 = scalar_lea.sflag [#allocation5], %s284_s18 }
  0x54   : > { %p418_p5 = pnand %p812_p2, %p693_p11 }
  0x56   : > { %p419_p6 = pneg %p418_p5 }
  0x58   : > { %588 = dma.done.wait (%p419_p6), %s285_s19, 128  }
  0x59   : > { %590 = vsyncadd (%p419_p6), %s285_s19, 4294967168  ;;  %s21_s14 = sadd.s32 1, %s613_s14   ;;  %s813_s9 = smov %s597_s10 }
  0x5a   : > { %p18_p4 = scmp.ge.s32.totalorder %s21_s14, 4   ;;  %s814_s10 = smov %s601_s11 }
  0x5b   : > { %s815_s11 = smov %s691_s23  ;;  %s816_s12 = smov %s609_s13 }
  0x5c   : > { %s817_s13 = smov %s819_s17  ;;  %20 = sbr.rel (!%p18_p4) target bundleno = 8 (0x8), region = 94 }
  0x61   :  { %290 = vsyncpa [#allocation4], 1 }
  0x62   :  { %292 = vsyncpa [#allocation4 + $0x1], 1 }
  0x63   :  { %293 = vsyncpa [#allocation7], 1 }
  0x64   :  { %295 = vsyncpa [#allocation7 + $0x1], 1 }
  0x65   :  { %296 = vsyncpa [#allocation5], 1 }
  0x66   :  { %298 = vsyncpa [#allocation5 + $0x1], 1 }

</bundles_post_ra>
